<compile_context>
chip_gen: v7x
topology: tpu7x:2x2x1
jax: 0.10.0
libtpu: 0.0.40
codegen_flags: <defaults>
</compile_context>

<pallas_src>
import functools

import jax
import jax.numpy as jnp
from jax.experimental import pallas as pl
from jax.experimental.pallas import tpu as pltpu

_EPS = 1e-12  # F.normalize default eps


def _round_up(x: int, m: int) -> int:
    return ((x + m - 1) // m) * m


def _sublane_tile(dtype) -> int:
    """Native sublane packing: 8 rows for 4-byte, 16 for 2-byte, 32 for 1-byte."""
    return {1: 32, 2: 16, 4: 8}.get(jnp.dtype(dtype).itemsize, 8)


def _vmem_capacity_bytes() -> int:
    """Per-core VMEM capacity; conservative fallback (v7x = 64 MiB) if unavailable."""
    try:
        return int(pltpu.get_tpu_info().vmem_capacity_bytes)
    except Exception:
        return 64 << 20


def _segment_sum_kernel(starts_ref, ends_ref, hs_ref, out_ref):
    """One grid step == (hidden block h, token chunk k): streaming segment sum.

    starts_ref : VMEM [S, 1] int32 — first flat token index per sequence
    ends_ref   : VMEM [S, 1] int32 — one-past-last flat token index per sequence
    hs_ref     : VMEM [TK, TH]     — current token chunk (native dtype)
    out_ref    : VMEM [S, TH] f32  — resident accumulator across the token axis
    """
    k = pl.program_id(1)
    tk = hs_ref.shape[0]
    num_seqs = out_ref.shape[0]

    starts = starts_ref[...]  # [S, 1] int32
    ends = ends_ref[...]      # [S, 1] int32 (precomputed starts + lens)

    # Global token index of every column of this chunk, per sequence row.
    tok = jax.lax.broadcasted_iota(jnp.int32, (num_seqs, tk), 1) + k * tk
    seg_mask = ((tok >= starts) & (tok < ends)).astype(hs_ref.dtype)  # exact 0/1

    # Segment sums for this chunk on the MXU, accumulated in f32.
    partial = jnp.dot(seg_mask, hs_ref[...], preferred_element_type=jnp.float32)

    @pl.when(k == 0)
    def _first():
        out_ref[...] = partial          # write directly: no zero-fill + RMW on step 0

    @pl.when(k > 0)
    def _accum():
        out_ref[...] = out_ref[...] + partial


@functools.partial(jax.jit, static_argnames=("tk",))
def simple_pooler(hidden_states: jax.Array, prompt_lens: jax.Array, *, tk: int = 1024) -> jax.Array:
    """MEAN pooling + L2 normalization over packed sequences.

    hidden_states: [total_tokens, hidden] (any float dtype)
    prompt_lens:   [num_seqs] int32, sum(prompt_lens) == total_tokens
    tk:            requested token-chunk size (static); clipped to the VMEM budget
                   and rounded to the dtype's sublane tile
    returns:       [num_seqs, hidden] float32
    """
    total_tokens, hidden = hidden_states.shape
    num_seqs = prompt_lens.shape[0]
    itemsize = jnp.dtype(hidden_states.dtype).itemsize
    sub = _sublane_tile(hidden_states.dtype)

    # ---- per-sequence segment boundaries (flat packed layout) ----
    lens = prompt_lens.astype(jnp.int32)
    ends = jnp.cumsum(lens)
    starts = ends - lens

    # ---- hidden tiling: lane-dense; split in two for v7x's 2 TensorCores ----
    h_pad = _round_up(hidden, 128)
    if h_pad >= 256 and h_pad % 256 == 0:
        th = h_pad // 2  # two "parallel" hidden blocks -> both TCs on v7x
    else:
        th = h_pad
    n_h = h_pad // th

    # ---- token-chunk size from a generation-aware VMEM budget ----
    cap = _vmem_capacity_bytes()
    budget = int(cap * 0.70)  # leave headroom for compiler-internal scratch
    resident = 2 * num_seqs * th * 4 + 4 * num_seqs * 4  # out block (x2 buffers) + metadata
    avail = max(budget - resident, 2 * sub * th * itemsize)
    tk_max = max(sub, (avail // (2 * th * itemsize)) // sub * sub)  # double-buffered input

    tk_req = max(int(tk), 4 * num_seqs)  # amortize the [S, TH] accumulator RMW
    tk_eff = min(tk_req, tk_max, _round_up(total_tokens, sub))
    tk_eff = max(sub, (tk_eff // sub) * sub)  # dtype-native sublane multiple

    t_pad = _round_up(total_tokens, tk_eff)
    pad_t, pad_h = t_pad - total_tokens, h_pad - hidden
    if pad_t or pad_h:
        # Padded tokens have flat index >= total_tokens -> outside every segment
        # -> contribute exactly zero; padded hidden columns are zero and sliced off.
        hidden_states = jnp.pad(hidden_states, ((0, pad_t), (0, pad_h)))

    grid_spec = pltpu.PrefetchScalarGridSpec(
        num_scalar_prefetch=0,
        grid=(n_h, t_pad // tk_eff),
        in_specs=[
            # Small per-sequence metadata, resident across the grid.
            pl.BlockSpec((num_seqs, 1), lambda h, k: (0, 0)),
            pl.BlockSpec((num_seqs, 1), lambda h, k: (0, 0)),
            # Token-tiled activations: double-buffered HBM -> VMEM column-stripe stream.
            # (Optional: pipeline_mode=pl.Buffered(3) on v7x if the VMEM budget closes.)
            pl.BlockSpec((tk_eff, th), lambda h, k: (k, h)),
        ],
        # Output block resident across the token (reduction) axis == accumulator;
        # distinct hidden blocks per "parallel" grid index (megacore-safe).
        out_specs=pl.BlockSpec((num_seqs, th), lambda h, k: (0, h)),
    )

    sums = pl.pallas_call(
        _segment_sum_kernel,
        out_shape=jax.ShapeDtypeStruct((num_seqs, h_pad), jnp.float32),
        grid_spec=grid_spec,
        compiler_params=pltpu.CompilerParams(
            dimension_semantics=("parallel", "arbitrary"),
            vmem_limit_bytes=int(cap * 0.9),
        ),
    )(starts.reshape(num_seqs, 1), ends.reshape(num_seqs, 1), hidden_states)

    # ---- tiny finalize (fused XLA epilogue over [S, H]) ----
    sums = sums[:, :hidden]
    lens_f = lens.astype(jnp.float32)[:, None]
    norm = jnp.sqrt(jnp.sum(sums * sums, axis=-1, keepdims=True))
    # F.normalize(mean, eps) with mean = sum/len  ==  sum / max(||sum||, eps*len);
    # the extra max(..., eps) returns a zero vector for len == 0 instead of NaN.
    denom = jnp.maximum(norm, jnp.maximum(_EPS * lens_f, _EPS))
    return sums / denom


def _reference(hidden_states, prompt_lens):
    """Pure-JAX reference mirroring MeanPool.forward_all + PoolerHead(normalize)."""
    lens = prompt_lens.astype(jnp.int32)
    starts = jnp.concatenate(
        [jnp.zeros((1,), jnp.int32), jnp.cumsum(lens)[:-1].astype(jnp.int32)]
    )
    outs = []
    for s, l in zip(list(starts), list(lens)):
        seg = hidden_states[int(s): int(s) + int(l)].astype(jnp.float32)
        mean = seg.mean(axis=0)
        norm = jnp.sqrt(jnp.sum(mean * mean))
        outs.append(mean / jnp.maximum(norm, _EPS))
    return jnp.stack(outs, axis=0)


if __name__ == "__main__":
    key = jax.random.PRNGKey(0)

    # --- Test 1: small canonical shapes (single chunk, single hidden block) ---
    num_seqs = 2
    hidden = 32
    prompt_lens = jnp.array([5, 11], dtype=jnp.int32)  # total_tokens = 16
    total_tokens = int(prompt_lens.sum())
    hidden_states = jax.random.normal(
        key, (total_tokens, hidden), dtype=jnp.float32
    ).astype(jnp.bfloat16)

    out = jax.block_until_ready(simple_pooler(hidden_states, prompt_lens))
    ref = _reference(hidden_states, prompt_lens)
    assert out.shape == (num_seqs, hidden)
    assert out.dtype == jnp.float32
    assert jnp.allclose(out, ref, atol=1e-5, rtol=1e-5), "mismatch vs reference (test 1)"

    # --- Test 2: multiple token chunks (exercise streaming accumulation) ---
    key2 = jax.random.PRNGKey(0)
    prompt_lens2 = jnp.array([7, 9, 20, 12], dtype=jnp.int32)  # total_tokens = 48
    total_tokens2 = int(prompt_lens2.sum())
    hidden2 = 64
    hidden_states2 = jax.random.normal(
        key2, (total_tokens2, hidden2), dtype=jnp.float32
    ).astype(jnp.bfloat16)

    out2 = jax.block_until_ready(simple_pooler(hidden_states2, prompt_lens2, tk=16))
    ref2 = _reference(hidden_states2, prompt_lens2)
    assert out2.shape == (4, hidden2)
    assert jnp.allclose(out2, ref2, atol=1e-5, rtol=1e-5), "mismatch vs reference (test 2)"

    # --- Test 3: hidden split into two "parallel" blocks + multiple chunks (f32) ---
    key3 = jax.random.PRNGKey(0)
    prompt_lens3 = jnp.array([3, 13, 8], dtype=jnp.int32)  # total_tokens = 24
    total_tokens3 = int(prompt_lens3.sum())
    hidden3 = 256  # h_pad = 256 -> two 128-wide hidden blocks
    hidden_states3 = jax.random.normal(
        key3, (total_tokens3, hidden3), dtype=jnp.float32
    )

    out3 = jax.block_until_ready(simple_pooler(hidden_states3, prompt_lens3, tk=8))
    ref3 = _reference(hidden_states3, prompt_lens3)
    assert out3.shape == (3, hidden3)
    assert jnp.allclose(out3, ref3, atol=1e-5, rtol=1e-5), "mismatch vs reference (test 3)"

    print("KERNEL_OK")
</pallas_src>

<mosaic_0001>
module attributes {stable_mosaic.version = 11 : i64} {
  func.func @_segment_sum_kernel(%arg0: i32, %arg1: i32, %arg2: memref<2x1xi32, #tpu.memory_space<vmem>>, %arg3: memref<2x1xi32, #tpu.memory_space<vmem>>, %arg4: memref<16x128xbf16, #tpu.memory_space<vmem>>, %arg5: memref<2x128xf32, #tpu.memory_space<vmem>>) attributes {dimension_semantics = [#tpu.dimension_semantics<parallel>, #tpu.dimension_semantics<arbitrary>], iteration_bounds = array<i64: 1, 1>, scalar_prefetch = 0 : i64, scratch_operands = 0 : i64, tpu.core_type = #tpu.core_type<tc>, window_params = [{pipeline_mode = #tpu.pipeline_mode<synchronous>, transform_indices = @transform_0, window_bounds = array<i64: 2, 1>}, {pipeline_mode = #tpu.pipeline_mode<synchronous>, transform_indices = @transform_1, window_bounds = array<i64: 2, 1>}, {transform_indices = @transform_2, window_bounds = array<i64: 16, 128>}, {transform_indices = @transform_3, window_bounds = array<i64: 2, 128>}]} {
    %c0 = arith.constant 0 : index
    %c0_0 = arith.constant 0 : index
    %0 = vector.load %arg2[%c0, %c0_0] : memref<2x1xi32, #tpu.memory_space<vmem>>, vector<2x1xi32>
    %c0_1 = arith.constant 0 : index
    %c0_2 = arith.constant 0 : index
    %1 = vector.load %arg3[%c0_1, %c0_2] : memref<2x1xi32, #tpu.memory_space<vmem>>, vector<2x1xi32>
    %2 = tpu.iota {dimensions = array<i32: 1>} : vector<2x16xi32>
    %c16_i32 = arith.constant 16 : i32
    %3 = arith.muli %arg1, %c16_i32 : i32
    %4 = vector.broadcast %3 : i32 to vector<2x16xi32>
    %5 = arith.addi %2, %4 : vector<2x16xi32>
    %6 = vector.broadcast %0 : vector<2x1xi32> to vector<2x16xi32>
    %7 = arith.cmpi sge, %5, %6 : vector<2x16xi32>
    %8 = vector.broadcast %1 : vector<2x1xi32> to vector<2x16xi32>
    %9 = arith.cmpi slt, %5, %8 : vector<2x16xi32>
    %10 = arith.andi %7, %9 : vector<2x16xi1>
    %11 = arith.extui %10 : vector<2x16xi1> to vector<2x16xi32>
    %12 = arith.sitofp %11 : vector<2x16xi32> to vector<2x16xf32>
    %13 = arith.truncf %12 : vector<2x16xf32> to vector<2x16xbf16>
    %c0_3 = arith.constant 0 : index
    %c0_4 = arith.constant 0 : index
    %14 = vector.load %arg4[%c0_3, %c0_4] : memref<16x128xbf16, #tpu.memory_space<vmem>>, vector<16x128xbf16>
    %cst = arith.constant dense<0.000000e+00> : vector<2x128xf32>
    %15 = tpu.matmul %13, %14, %cst {dimension_numbers = #tpu.dot_dimension_numbers<[1], [0], [0], [1], [0, 0, 1, 1], [], []>} : vector<2x16xbf16>, vector<16x128xbf16>, vector<2x128xf32> -> vector<2x128xf32>
    %c0_i32 = arith.constant 0 : i32
    %16 = arith.cmpi eq, %arg1, %c0_i32 : i32
    %17 = arith.extui %16 : i1 to i32
    %c0_i32_5 = arith.constant 0 : i32
    %18 = arith.cmpi ne, %17, %c0_i32_5 : i32
    scf.if %18 {
      %c0_8 = arith.constant 0 : index
      %c0_9 = arith.constant 0 : index
      %22 = vector.load %arg5[%c0_8, %c0_9] : memref<2x128xf32, #tpu.memory_space<vmem>>, vector<2x128xf32>
      tpu.vector_store %arg5[%c0_8, %c0_9], %15 {strides = array<i32>} : memref<2x128xf32, #tpu.memory_space<vmem>>, vector<2x128xf32>,
    } else {
    }
    %c0_i32_6 = arith.constant 0 : i32
    %19 = arith.cmpi sgt, %arg1, %c0_i32_6 : i32
    %20 = arith.extui %19 : i1 to i32
    %c0_i32_7 = arith.constant 0 : i32
    %21 = arith.cmpi ne, %20, %c0_i32_7 : i32
    scf.if %21 {
      %c0_8 = arith.constant 0 : index
      %c0_9 = arith.constant 0 : index
      %22 = vector.load %arg5[%c0_8, %c0_9] : memref<2x128xf32, #tpu.memory_space<vmem>>, vector<2x128xf32>
      %23 = arith.addf %22, %15 : vector<2x128xf32>
      %c0_10 = arith.constant 0 : index
      %c0_11 = arith.constant 0 : index
      %24 = vector.load %arg5[%c0_10, %c0_11] : memref<2x128xf32, #tpu.memory_space<vmem>>, vector<2x128xf32>
      tpu.vector_store %arg5[%c0_10, %c0_11], %23 {strides = array<i32>} : memref<2x128xf32, #tpu.memory_space<vmem>>, vector<2x128xf32>,
    } else {
    }
    return
  }
  func.func @transform_0(%arg0: i32, %arg1: i32) -> (i32, i32) {
    %c0_i32 = arith.constant 0 : i32
    %c0_i32_0 = arith.constant 0 : i32
    %c0_i32_1 = arith.constant 0 : i32
    return %c0_i32, %c0_i32_0 : i32, i32
  }
  func.func @transform_1(%arg0: i32, %arg1: i32) -> (i32, i32) {
    %c0_i32 = arith.constant 0 : i32
    %c0_i32_0 = arith.constant 0 : i32
    %c0_i32_1 = arith.constant 0 : i32
    return %c0_i32, %c0_i32_0 : i32, i32
  }
  func.func @transform_2(%arg0: i32, %arg1: i32) -> (i32, i32) {
    %c0_i32 = arith.constant 0 : i32
    return %arg1, %arg0 : i32, i32
  }
  func.func @transform_3(%arg0: i32, %arg1: i32) -> (i32, i32) {
    %c0_i32 = arith.constant 0 : i32
    %c0_i32_0 = arith.constant 0 : i32
    return %c0_i32, %arg0 : i32, i32
  }
}

</mosaic_0001>

<bundles_post_ra>
// kernel: simple_pooler.1
= control target key start
LH: loop header
LB: loop body
LE: loop exit
PB: predicated region body
PF: predicated region fallthrough
CT: control target
= control target key end

     0   :  { %v118_v0 = vmov 0   ;;  %v119_v4 = vmov 0.0   ;;  %vm120_vm0 = vmmov 0   ;;  %v17_v5 = vlaneseq  ;;  %s153_s0 = inlined_call_operand.vmem [shape: s32[2,1], index: 0, kind: input, shape index: {}]   ;;  %s154_s1 = inlined_call_operand.vmem [shape: s32[2,1], index: 1, kind: input, shape index: {}]   ;;  %s155_s2 = inlined_call_operand.vmem [shape: bf16[16,128], index: 2, kind: input, shape index: {}]   ;;  %s156_s3 = inlined_call_operand.vmem [shape: f32[2,128], index: 3, kind: output, shape index: {}]  }
   0x1   :  { %116 = vset.pattern.permute.xlu0 %v118_v0  ;;  %v15_v1 = vld [vmem:[%s153_s0] sm:$0x3]  ;;  %107 = vmatprep.subr.bf16.mxu0 %v119_v4  ;;  %vm42_vm4 = vcmask 130048  }
   0x2   :  { %23 = vperm.xlu0 %116, %v15_v1   ;;  %v16_v2 = vld [vmem:[%s154_s1] sm:$0x3]  ;;  %109 = vmatprep.mubr.msk.bf16.mxu0 %vm120_vm0, %v119_v4  ;;  %v18_v7 = vand.u32 127, %v17_v5 }
   0x3   :  { %v117_v3 = vld [vmem:[%s155_s2] sm:$0xff]  }
   0x4   :  { %108 = vmatpush3.bf16.msra.mxu0 %v117_v3 }
   0x6   :  { %27 = vperm.xlu0 %116, %v16_v2  }
  0x81   :  { %v24_v6 = vpop.permute.xlu0 %23 }
  0x82   :  { %vm25_vm1 = vcmp.ge.s32.totalorder %v18_v7, %v24_v6 }
  0x85   :  { %v28_v8 = vpop.permute.xlu0 %27 }
  0x86   :  { %vm29_vm2 = vcmp.lt.s32.totalorder %v18_v7, %v28_v8 }
  0x87   :  { %vm30_vm3 = vmand %vm25_vm1, %vm29_vm2 }
  0x88   :  { %v102_v9 = vsel %vm30_vm3, 1.0, %v119_v4 }
  0x89   :  { %v33_v10 = vpack.c.bf16 %v102_v9, %v102_v9 }
  0x8b   :  { %110 = vmatmul.mubr.msk.bf16.vlgmr.msra.gmra.mrb[0].mxu0 %vm42_vm4, %v33_v10 }
 0x15e   :  { %v80_v11 = vpop.f32.mrb[0].mxu0 }
 0x15f   :  { %90 = vst [vmem:[%s156_s3] sm:$0x3] %v80_v11  ;;  %v111_v12 = vpop.f32.mrb[1].mxu0 }
 0x160   :  { %v83_v13 = vpop.f32.mrb[2].mxu0 }
 0x161   :  { %v112_v14 = vpop.f32.mrb[3].mxu0 }

</bundles_post_ra>
